<compile_context>
chip_gen: v5e
topology: v5e:2x2
jax: 0.10.0
libtpu: 0.0.40
codegen_flags: <defaults>
</compile_context>

<pallas_src>
import functools

import jax
import jax.numpy as jnp
from jax.experimental import pallas as pl
from jax.experimental.pallas import tpu as pltpu


def _round_up(x, m):
    return ((x + m - 1) // m) * m


def _dfl_kernel(pred_ref, targets_ref, partial_ref, *, n_rows, row_tile):
    """Per-tile DFL partial sum.

    pred_ref:    (row_tile, C)   logits
    targets_ref: (row_tile, C-1) continuous targets
    partial_ref: (1, 1) SMEM     partial loss sum for this tile
    """
    x = pred_ref[...].astype(jnp.float32)
    t = targets_ref[...].astype(jnp.float32)

    # Shared BCE-with-logits base: max(x,0) + log1p(exp(-|x|)).
    # x_right[:, j] == x_left[:, j+1], so compute it once over all C columns.
    base = jnp.maximum(x, 0.0) + jnp.log1p(jnp.exp(-jnp.abs(x)))

    x_l, x_r = x[:, :-1], x[:, 1:]
    b_l, b_r = base[:, :-1], base[:, 1:]

    t_left = jnp.floor(t)
    t_right = t_left + 1.0
    w_right = t - t_left
    w_left = 1.0 - w_right

    # BCEWithLogits(x, t) = base(x) - x*t
    loss = (b_l - x_l * t_left) * w_left + (b_r - x_r * t_right) * w_right

    if n_rows % row_tile != 0:
        # Last block is padded: zero out contributions from rows >= n_rows.
        row = (jax.lax.broadcasted_iota(jnp.int32, loss.shape, 0)
               + pl.program_id(0) * row_tile)
        loss = jnp.where(row < n_rows, loss, 0.0)

    partial_ref[0, 0] = jnp.sum(loss)


def dfl_loss(pred, targets, *, row_tile=512):
    """Distribution Focal Loss.

    pred:    (N, C)   logits over C bins.
    targets: (N, C-1) continuous bin targets.
    Returns scalar f32 mean loss (matches the PyTorch module).
    """
    n, c = pred.shape
    assert targets.shape == (n, c - 1), (pred.shape, targets.shape)

    # Row tile: multiple of 8 (sublane), big enough to pipeline well, but not
    # wastefully larger than N for small inputs.  Per-tile VMEM footprint with
    # double buffering is tiny (well under v7x's 64 MiB), so 512 rows is safe
    # on all generations.
    tile = min(row_tile, _round_up(n, 8))
    grid = pl.cdiv(n, tile)

    kernel = functools.partial(_dfl_kernel, n_rows=n, row_tile=tile)

    partials = pl.pallas_call(
        kernel,
        out_shape=jax.ShapeDtypeStruct((grid, 1), jnp.float32),
        grid=(grid,),
        in_specs=[
            pl.BlockSpec((tile, c), lambda i: (i, 0)),
            pl.BlockSpec((tile, c - 1), lambda i: (i, 0)),
        ],
        out_specs=pl.BlockSpec(
            (1, 1), lambda i: (i, 0), memory_space=pltpu.MemorySpace.SMEM
        ),
        compiler_params=pltpu.CompilerParams(
            dimension_semantics=("parallel",)
        ),
    )(pred, targets)

    # Tiny epilogue: combine per-tile partials and apply the global mean.
    return jnp.sum(partials) / jnp.float32(n * (c - 1))


def _dfl_loss_ref(pred, targets):
    """Pure-JAX reference matching the PyTorch module."""
    pred = pred.astype(jnp.float32)
    targets = targets.astype(jnp.float32)
    x_l = pred[:, :-1]
    x_r = pred[:, 1:]
    t_left = jnp.floor(targets)
    t_right = t_left + 1.0
    w_left = t_right - targets
    w_right = targets - t_left
    bce = lambda x, t: jnp.maximum(x, 0.0) - x * t + jnp.log1p(jnp.exp(-jnp.abs(x)))
    return jnp.mean(bce(x_l, t_left) * w_left + bce(x_r, t_right) * w_right)


if __name__ == "__main__":
    key = jax.random.PRNGKey(0)
    k1, k2, k3, k4 = jax.random.split(key, 4)

    # YOLOv8 DFL shapes: reg_max=16 -> C = 17 bins; N = flattened anchors.
    C = 17

    # Case 1: small, single block (tile == N).
    N1 = 64
    pred1 = jax.random.normal(k1, (N1, C), dtype=jnp.float32)
    tgt1 = jax.random.uniform(k2, (N1, C - 1), dtype=jnp.float32,
                              minval=0.0, maxval=15.0)
    out1 = jax.block_until_ready(dfl_loss(pred1, tgt1))
    ref1 = jax.block_until_ready(_dfl_loss_ref(pred1, tgt1))
    assert jnp.allclose(out1, ref1, rtol=1e-5, atol=1e-6), (out1, ref1)

    # Case 2: multiple tiles + ragged last tile (exercises the grid, the
    # per-block partial sums, and the in-kernel row mask).
    N2 = 72
    pred2 = jax.random.normal(k3, (N2, C), dtype=jnp.float32)
    tgt2 = jax.random.uniform(k4, (N2, C - 1), dtype=jnp.float32,
                              minval=0.0, maxval=15.0)
    out2 = jax.block_until_ready(dfl_loss(pred2, tgt2, row_tile=32))
    ref2 = jax.block_until_ready(_dfl_loss_ref(pred2, tgt2))
    assert jnp.allclose(out2, ref2, rtol=1e-5, atol=1e-6), (out2, ref2)

    print("KERNEL_OK")
</pallas_src>

<mosaic_0001>
module attributes {stable_mosaic.version = 11 : i64} {
  func.func @_dfl_kernel(%arg0: i32, %arg1: memref<64x17xf32, #tpu.memory_space<vmem>>, %arg2: memref<64x16xf32, #tpu.memory_space<vmem>>, %arg3: memref<1x1xf32, #tpu.memory_space<smem>>) attributes {dimension_semantics = [#tpu.dimension_semantics<parallel>], iteration_bounds = array<i64: 1>, scalar_prefetch = 0 : i64, scratch_operands = 0 : i64, tpu.core_type = #tpu.core_type<tc>, window_params = [{transform_indices = @transform_0, window_bounds = array<i64: 64, 17>}, {transform_indices = @transform_1, window_bounds = array<i64: 64, 16>}, {transform_indices = @transform_2, window_bounds = array<i64: 1, 1>}]} {
    %c0 = arith.constant 0 : index
    %c0_0 = arith.constant 0 : index
    %0 = vector.load %arg1[%c0, %c0_0] : memref<64x17xf32, #tpu.memory_space<vmem>>, vector<64x17xf32>
    %c0_1 = arith.constant 0 : index
    %c0_2 = arith.constant 0 : index
    %1 = vector.load %arg2[%c0_1, %c0_2] : memref<64x16xf32, #tpu.memory_space<vmem>>, vector<64x16xf32>
    %cst = arith.constant 0.000000e+00 : f32
    %2 = vector.broadcast %cst : f32 to vector<64x17xf32>
    %3 = arith.maximumf %0, %2 : vector<64x17xf32>
    %4 = math.absf %0 : vector<64x17xf32>
    %cst_3 = arith.constant 0.000000e+00 : f32
    %5 = vector.broadcast %cst_3 : f32 to vector<64x17xf32>
    %6 = arith.subf %5, %4 : vector<64x17xf32>
    %7 = math.exp %6 : vector<64x17xf32>
    %8 = math.log1p %7 : vector<64x17xf32>
    %9 = arith.addf %3, %8 : vector<64x17xf32>
    %10 = vector.extract_strided_slice %0 {offsets = [0, 0], sizes = [64, 16], strides = [1, 1]} : vector<64x17xf32> to vector<64x16xf32>
    %11 = vector.extract_strided_slice %0 {offsets = [0, 1], sizes = [64, 16], strides = [1, 1]} : vector<64x17xf32> to vector<64x16xf32>
    %12 = vector.extract_strided_slice %9 {offsets = [0, 0], sizes = [64, 16], strides = [1, 1]} : vector<64x17xf32> to vector<64x16xf32>
    %13 = vector.extract_strided_slice %9 {offsets = [0, 1], sizes = [64, 16], strides = [1, 1]} : vector<64x17xf32> to vector<64x16xf32>
    %14 = math.floor %1 : vector<64x16xf32>
    %cst_4 = arith.constant 1.000000e+00 : f32
    %15 = vector.broadcast %cst_4 : f32 to vector<64x16xf32>
    %16 = arith.addf %14, %15 : vector<64x16xf32>
    %17 = arith.subf %1, %14 : vector<64x16xf32>
    %cst_5 = arith.constant 1.000000e+00 : f32
    %18 = vector.broadcast %cst_5 : f32 to vector<64x16xf32>
    %19 = arith.subf %18, %17 : vector<64x16xf32>
    %20 = arith.mulf %10, %14 : vector<64x16xf32>
    %21 = arith.subf %12, %20 : vector<64x16xf32>
    %22 = arith.mulf %21, %19 : vector<64x16xf32>
    %23 = arith.mulf %11, %16 : vector<64x16xf32>
    %24 = arith.subf %13, %23 : vector<64x16xf32>
    %25 = arith.mulf %24, %17 : vector<64x16xf32>
    %26 = arith.addf %22, %25 : vector<64x16xf32>
    %27 = vector.shape_cast %26 : vector<64x16xf32> to vector<1x64x16xf32>
    %cst_6 = arith.constant dense<0.000000e+00> : vector<1xf32>
    %28 = vector.multi_reduction <add>, %27, %cst_6 [1, 2] : vector<1x64x16xf32> to vector<1xf32>
    %29 = vector.shape_cast %28 : vector<1xf32> to vector<1x1x1xf32>
    %30 = vector.extract %29[0, 0, 0] : f32 from vector<1x1x1xf32>
    %c0_7 = arith.constant 0 : index
    %c0_8 = arith.constant 0 : index
    %31 = memref.load %arg3[%c0_7, %c0_8] : memref<1x1xf32, #tpu.memory_space<smem>>
    memref.store %30, %arg3[%c0_7, %c0_8] : memref<1x1xf32, #tpu.memory_space<smem>>
    return
  }
  func.func @transform_0(%arg0: i32) -> (i32, i32) {
    %c0_i32 = arith.constant 0 : i32
    %c0_i32_0 = arith.constant 0 : i32
    return %arg0, %c0_i32 : i32, i32
  }
  func.func @transform_1(%arg0: i32) -> (i32, i32) {
    %c0_i32 = arith.constant 0 : i32
    %c0_i32_0 = arith.constant 0 : i32
    return %arg0, %c0_i32 : i32, i32
  }
  func.func @transform_2(%arg0: i32) -> (i32, i32) {
    %c0_i32 = arith.constant 0 : i32
    %c0_i32_0 = arith.constant 0 : i32
    return %arg0, %c0_i32 : i32, i32
  }
}

</mosaic_0001>

<bundles_post_ra>
// kernel: tpu_custom_call.1
= control target key start
LH: loop header
LB: loop body
LE: loop exit
PB: predicated region body
PF: predicated region fallthrough
CT: control target
= control target key end

     0   :  { %s746_s0 = inlined_call_operand.vmem [shape: f32[64,17], index: 0, kind: input, shape index: {}]   ;;  %s747_s1 = inlined_call_operand.vmem [shape: f32[64,16], index: 1, kind: input, shape index: {}]   ;;  %s748_s2 = inlined_call_operand.hbm [shape: f32[1,1], index: 2, kind: output, shape index: {}]  }
   0x1   :  { %v22_v0 = vld [vmem:[%s747_s1 + $0x10] sm:$0xff]  ;;  %v20_v1 = vld [vmem:[%s747_s1] sm:$0xff]  ;;  %v23_v4 = vld [vmem:[%s747_s1 + $0x18] sm:$0xff] }
   0x2   :  { %v449_v2 = vfloor.f32 %v22_v0  ;;  %v451_v3 = vfloor.f32 %v20_v1  ;;  %v21_v5 = vld [vmem:[%s747_s1 + $0x8] sm:$0xff] }
   0x3   :  { %7 = vsyncpa [#allocation3], 0  ;;  %s425_s17 = smov 1   ;;  %v466_v9 = vfloor.f32 %v23_v4  ;;  %v468_v10 = vfloor.f32 %v21_v5  ;;  %v24_v13 = vld [vmem:[%s747_s1 + $0x20] sm:$0xff]  ;;  %v25_v16 = vld [vmem:[%s747_s1 + $0x28] sm:$0xff]  ;;  %vm332_vm8 = vcmask 130048  }
   0x4   :  { %v158_v6 = vadd.f32 1.0, %v449_v2  ;;  %v156_v7 = vadd.f32 1.0, %v451_v3  ;;  %v462_v8 = vsub.f32 %v20_v1, %v451_v3  ;;  %v482_v15 = vfloor.f32 %v24_v13  ;;  %v26_v20 = vld [vmem:[%s747_s1 + $0x30] sm:$0xff]  ;;  %v27_v26 = vld [vmem:[%s747_s1 + $0x38] sm:$0xff]  ;;  %v542_v32 = vld [vmem:[%s746_s0] sm:$0xff]  ;;  %s364_s15 = sshll.u32 %s748_s2, 4  ;;  %s365_s15 = int_to_ptr.hbm [resolvable:$true] %s364_s15 }
   0x5   :  { %v159_v11 = vadd.f32 1.0, %v466_v9  ;;  %v157_v12 = vadd.f32 1.0, %v468_v10  ;;  %v478_v14 = vsub.f32 %v21_v5, %v468_v10  ;;  %v489_v17 = vfloor.f32 %v25_v16  ;;  %v548_v35 = vld [vmem:[%s746_s0 + $0x8] sm:$0xff]  ;;  %v553_v36 = vld [vmem:[%s746_s0 + $0x10] sm:$0xff]  ;;  %v560_v41 = vld [vmem:[%s746_s0 + $0x20] sm:$0xff] }
   0x6   :  { %216 = vrot.lane.b32.xlu1 %v158_v6, %s425_s17  ;;  %212 = vrot.lane.b32.xlu0 %v156_v7, %s425_s17  ;;  %v492_v18 = vsub.f32 %v22_v0, %v449_v2  ;;  %v160_v19 = vadd.f32 1.0, %v482_v15  ;;  %v502_v22 = vfloor.f32 %v26_v20  ;;  %v507_v24 = vsub.f32 %v23_v4, %v466_v9  ;;  %v566_v45 = vld [vmem:[%s746_s0 + $0x18] sm:$0xff]  ;;  %v572_v51 = vld [vmem:[%s746_s0 + $0x30] sm:$0xff] }
   0x7   :  { %260 = vrot.lane.b32.xlu2 %v462_v8, %s425_s17  ;;  %v161_v21 = vadd.f32 1.0, %v489_v17  ;;  %v510_v25 = vsub.f32 %v24_v13, %v482_v15  ;;  %v518_v27 = vfloor.f32 %v27_v26  ;;  %v523_v28 = vsub.f32 %v25_v16, %v489_v17  ;;  %v577_v54 = vld [vmem:[%s746_s0 + $0x28] sm:$0xff] }
   0x8   :  { %v162_v23 = vadd.f32 1.0, %v502_v22  ;;  %v527_v30 = vsub.f32 %v26_v20, %v502_v22  ;;  %v36_v33 = vand.u32 2147483647, %v542_v32  ;;  %v37_v38 = vand.u32 2147483647, %v548_v35 }
   0x9   :  { %v163_v29 = vadd.f32 1.0, %v518_v27  ;;  %v535_v31 = vsub.f32 %v27_v26, %v518_v27  ;;  %v38_v39 = vand.u32 2147483647, %v553_v36  ;;  %v40_v44 = vand.u32 2147483647, %v560_v41 }
   0xa   :  { %v44_v34 = vsub.f32 0.0, %v36_v33  ;;  %v45_v40 = vsub.f32 0.0, %v37_v38  ;;  %v39_v48 = vand.u32 2147483647, %v566_v45  ;;  %v42_v57 = vand.u32 2147483647, %v572_v51 }
   0xb   :  { %v46_v42 = vsub.f32 0.0, %v38_v39  ;;  %v48_v49 = vsub.f32 0.0, %v40_v44  ;;  %v41_v60 = vand.u32 2147483647, %v577_v54 }
   0xc   :  { %v52_v37 = vmul.f32 1.442695, %v44_v34  ;;  %v54_v43 = vmul.f32 1.442695, %v45_v40  ;;  %v47_v52 = vsub.f32 0.0, %v39_v48  ;;  %v50_v63 = vsub.f32 0.0, %v42_v57 }
   0xd   :  { %v56_v47 = vmul.f32 1.442695, %v46_v42  ;;  %v60_v53 = vmul.f32 1.442695, %v48_v49  ;;  %v49_v6 = vsub.f32 0.0, %v41_v60 }
   0xe   :  { %218 = vrot.lane.b32.xlu1 %v159_v11, %s425_s17  ;;  %214 = vrot.lane.b32.xlu0 %v157_v12, %s425_s17  ;;  %379 = vpow2.f32 %v52_v37  ;;  %v58_v59 = vmul.f32 1.442695, %v47_v52  ;;  %v64_v16 = vmul.f32 1.442695, %v50_v63 }
   0xf   :  { %262 = vrot.lane.b32.xlu2 %v478_v14, %s425_s17  ;;  %381 = vpow2.f32 %v54_v43  ;;  %v62_v20 = vmul.f32 1.442695, %v49_v6 }
  0x10   :  { %383 = vpow2.f32 %v56_v47 }
  0x14   :  { %v380_v46 = vpop.eup %379 }
  0x15   :  { %v68_v50 = vadd.f32 1.0, %v380_v46  ;;  %v382_v55 = vpop.eup %381  ;;  %v71_v56 = vmul.f32 -0.5, %v380_v46  ;;  %v74_v4 = vand.u32 2147483647, %v380_v46 }
  0x16   :  { %264 = vrot.lane.b32.xlu1 %v492_v18, %s425_s17  ;;  %220 = vrot.lane.b32.xlu0 %v160_v19, %s425_s17  ;;  %v384_v58 = vpop.eup %383  ;;  %v77_v61 = vadd.f32 1.0, %v382_v55  ;;  %v80_v13 = vmul.f32 -0.5, %v382_v55  ;;  %v83_v40 = vand.u32 2147483647, %v382_v55 }
  0x17   :  { %222 = vrot.lane.b32.xlu2 %v161_v21, %s425_s17  ;;  %385 = vlog2.f32 %v68_v50  ;;  %v72_v62 = vadd.f32 1.0, %v71_v56  ;;  %v86_v5 = vadd.f32 1.0, %v384_v58  ;;  %vm583_vm0 = vcmp.lt.f32.partialorder %v74_v4, 0.0004427343 }
  0x18   :  { %387 = vpow2.f32 %v60_v53  ;;  %v89_v21 = vmul.f32 -0.5, %v384_v58  ;;  %v81_v37 = vadd.f32 1.0, %v80_v13  ;;  %v92_v48 = vand.u32 2147483647, %v384_v58 }
  0x19   :  { %389 = vpow2.f32 %v58_v59  ;;  %v73_v12 = vmul.f32 %v380_v46, %v72_v62  ;;  %vm604_vm1 = vcmp.lt.f32.partialorder %v83_v40, 0.0004427343 }
  0x1a   :  { %391 = vlog2.f32 %v77_v61  ;;  %v90_v42 = vadd.f32 1.0, %v89_v21  ;;  %v82_v56 = vmul.f32 %v382_v55, %v81_v37  ;;  %vm612_vm2 = vcmp.lt.f32.partialorder %v92_v48, 0.0004427343 }
  0x1b   :  { %393 = vlog2.f32 %v86_v5  ;;  %v29_v5 = vmax.f32 %v548_v35, 0.0  ;;  %v30_v21 = vmax.f32 %v553_v36, 0.0 }
  0x1c   :  { %395 = vpow2.f32 %v64_v16 }
  0x1d   :  { %v386_v0 = vpop.eup %385  ;;  %397 = vpow2.f32 %v62_v20 }
  0x1e   :  { %224 = vrot.lane.b32.xlu1 %v162_v23, %s425_s17  ;;  %266 = vrot.lane.b32.xlu0 %v507_v24, %s425_s17  ;;  %v581_v7 = vpop.eup %387  ;;  %v70_v11 = vmul.f32 0.6931472, %v386_v0  ;;  %v28_v23 = vmax.f32 %v542_v32, 0.0  ;;  %v91_v0 = vmul.f32 %v384_v58, %v90_v42 }
  0x1f   :  { %268 = vrot.lane.b32.xlu2 %v510_v25, %s425_s17  ;;  %v104_v26 = vadd.f32 1.0, %v581_v7  ;;  %v594_v33 = vpop.eup %389  ;;  %v107_v57 = vmul.f32 -0.5, %v581_v7  ;;  %v110_v19 = vand.u32 2147483647, %v581_v7 }
  0x20   :  { %v76_v34 = vsel %vm583_vm0, %v73_v12, %v70_v11  ;;  %v392_v39 = vpop.eup %391  ;;  %v95_v49 = vadd.f32 1.0, %v594_v33  ;;  %v98_v13 = vmul.f32 -0.5, %v594_v33  ;;  %v101_v48 = vand.u32 2147483647, %v594_v33 }
  0x21   :  { %v394_v44 = vpop.eup %393  ;;  %v599_v46 = vadd.f32 %v76_v34, %v28_v23  ;;  %399 = vlog2.f32 %v104_v26  ;;  %v79_v53 = vmul.f32 0.6931472, %v392_v39  ;;  %v108_v12 = vadd.f32 1.0, %v107_v57 }
  0x22   :  { %v608_v62 = vpop.eup %395  ;;  %v88_v63 = vmul.f32 0.6931472, %v394_v44  ;;  %401 = vlog2.f32 %v95_v49  ;;  %v99_v40 = vadd.f32 1.0, %v98_v13  ;;  %vm632_vm3 = vcmp.lt.f32.partialorder %v110_v19, 0.0004427343 }
  0x23   :  { %v616_v55 = vpop.eup %397  ;;  %v85_v11 = vsel %vm604_vm1, %v82_v56, %v79_v53  ;;  %v122_v20 = vadd.f32 1.0, %v608_v62  ;;  %v125_v56 = vmul.f32 -0.5, %v608_v62  ;;  %vm649_vm4 = vcmp.lt.f32.partialorder %v101_v48, 0.0004427343 }
  0x24   :  { %v625_v23 = vadd.f32 %v85_v11, %v29_v5  ;;  %v94_v26 = vsel %vm612_vm2, %v91_v0, %v88_v63  ;;  %v113_v34 = vadd.f32 1.0, %v616_v55  ;;  %v100_v63 = vmul.f32 %v594_v33, %v99_v40 }
  0x25   :  { %v639_v53 = vadd.f32 %v94_v26, %v30_v21  ;;  %v116_v0 = vmul.f32 -0.5, %v616_v55  ;;  %v126_v6 = vadd.f32 1.0, %v125_v56  ;;  %v128_v33 = vand.u32 2147483647, %v608_v62 }
  0x26   :  { %270 = vrot.lane.b32.xlu1 %v523_v28, %s425_s17  ;;  %226 = vrot.lane.b32.xlu0 %v163_v29, %s425_s17  ;;  %v592_v29 = vld [vmem:[%s746_s0 + $0x38] sm:$0xff]  ;;  %s426_s0 = smov 127  }
  0x27   :  { %272 = vrot.lane.b32.xlu2 %v527_v30, %s425_s17  ;;  %v43_v38 = vand.u32 2147483647, %v592_v29  ;;  %v400_v16 = vpop.eup %399  ;;  %vm671_vm5 = vcmp.lt.f32.partialorder %v128_v33, 0.0004427343 }
  0x28   :  { %v106_v39 = vmul.f32 0.6931472, %v400_v16  ;;  %v402_v42 = vpop.eup %401  ;;  %v31_v16 = vmax.f32 %v566_v45, 0.0 }
  0x29   :  { %v51_v43 = vsub.f32 0.0, %v43_v38  ;;  %v97_v61 = vmul.f32 0.6931472, %v402_v42 }
  0x2b   :  { %v66_v59 = vmul.f32 1.442695, %v51_v43  ;;  %v103_v19 = vsel %vm649_vm4, %v100_v63, %v97_v61 }
  0x2c   :  { %v669_v44 = vadd.f32 %v103_v19, %v31_v16 }
  0x2d   :  { %403 = vpow2.f32 %v66_v59  ;;  %v32_v59 = vmax.f32 %v560_v41, 0.0 }
  0x2e   :  { %274 = vrot.lane.b32.xlu0 %v535_v31, %s425_s17  ;;  %405 = vlog2.f32 %v122_v20  ;;  %v117_v20 = vadd.f32 1.0, %v116_v0  ;;  %s427_s17 = smov [#allocation2]  }
  0x2f   :  { %407 = vlog2.f32 %v113_v34 }
  0x33   :  { %v637_v49 = vpop.eup %403 }
  0x34   :  { %v406_v11 = vpop.eup %405  ;;  %v134_v40 = vmul.f32 -0.5, %v637_v49 }
  0x35   :  { %v408_v21 = vpop.eup %407 }
  0x36   :  { %v135_v61 = vadd.f32 1.0, %v134_v40 }
  0x61   :  { %v261_v1 = vpop.permute.xlu2 %260 }
  0x69   :  { %v263_v47 = vpop.permute.xlu2 %262 }
  0x78   :  { %v217_v50 = vpop.permute.xlu1 %216  ;;  %v213_v52 = vpop.permute.xlu0 %212 }
  0x79   :  { %v236_v60 = vmul.f32 %v213_v52, %v542_v32  ;;  %v223_v52 = vpop.permute.xlu2 %222 }
  0x7b   :  { %v244_v4 = vsub.f32 %v599_v46, %v236_v60 }
  0x7d   :  { %v284_v58 = vmul.f32 %v261_v1, %v244_v4  ;;  %v109_v1 = vmul.f32 %v581_v7, %v108_v12  ;;  %v238_v7 = vmul.f32 %v217_v50, %v553_v36  ;;  %v131_v50 = vadd.f32 1.0, %v637_v49 }
  0x7f   :  { %300 = vrot.lane.b32.xlu1 %v284_v58, %s426_s0  ;;  %v112_v60 = vsel %vm632_vm3, %v109_v1, %v106_v39  ;;  %v246_v12 = vsub.f32 %v639_v53, %v238_v7  ;;  %409 = vlog2.f32 %v131_v50  ;;  %v124_v39 = vmul.f32 0.6931472, %v406_v11 }
  0x80   :  { %v219_v37 = vpop.permute.xlu1 %218  ;;  %v215_v38 = vpop.permute.xlu0 %214  ;;  %v656_v13 = vadd.f32 %v112_v60, %v32_v59  ;;  %v127_v1 = vmul.f32 %v608_v62, %v126_v6  ;;  %v115_v7 = vmul.f32 0.6931472, %v408_v21  ;;  %v34_v62 = vmax.f32 %v572_v51, 0.0 }
  0x81   :  { %v237_v43 = vmul.f32 %v215_v38, %v548_v35  ;;  %v119_v38 = vand.u32 2147483647, %v616_v55  ;;  %v239_v42 = vmul.f32 %v219_v37, %v566_v45  ;;  %v269_v56 = vpop.permute.xlu2 %268  ;;  %v35_v21 = vmax.f32 %v592_v29, 0.0 }
  0x82   :  { %v130_v37 = vsel %vm671_vm5, %v127_v1, %v124_v39  ;;  %v172_v60 = vsub.f32 1.0, %v462_v8 }
  0x83   :  { %v245_v57 = vsub.f32 %v625_v23, %v237_v43  ;;  %vm677_vm6 = vcmp.lt.f32.partialorder %v119_v38, 0.0004427343  ;;  %v247_v0 = vsub.f32 %v669_v44, %v239_v42  ;;  %v690_v16 = vadd.f32 %v130_v37, %v34_v62 }
  0x84   :  { %v173_v62 = vsub.f32 1.0, %v478_v14  ;;  %v174_v14 = vsub.f32 1.0, %v492_v18 }
  0x85   :  { %v285_v4 = vmul.f32 %v263_v47, %v245_v57  ;;  %v118_v57 = vmul.f32 %v616_v55, %v117_v20  ;;  %v410_v63 = vpop.eup %409  ;;  %v137_v55 = vand.u32 2147483647, %v637_v49 }
  0x86   :  { %v133_v33 = vmul.f32 0.6931472, %v410_v63 }
  0x87   :  { %302 = vrot.lane.b32.xlu2 %v285_v4, %s426_s0  ;;  %v33_v4 = vmax.f32 %v577_v54, 0.0  ;;  %v121_v6 = vsel %vm677_vm6, %v118_v57, %v115_v7  ;;  %vm138_vm7 = vcmp.lt.f32.partialorder %v137_v55, 0.0004427343  ;;  %v181_v7 = vmul.f32 %v468_v10, %v548_v35 }
  0x88   :  { %v265_v58 = vpop.permute.xlu1 %264  ;;  %v221_v47 = vpop.permute.xlu0 %220 }
  0x89   :  { %v286_v26 = vmul.f32 %v265_v58, %v246_v12  ;;  %v240_v34 = vmul.f32 %v221_v47, %v560_v41  ;;  %v136_v58 = vmul.f32 %v637_v49, %v135_v61  ;;  %v241_v47 = vmul.f32 %v223_v52, %v577_v54 }
  0x8a   :  { %v695_v19 = vadd.f32 %v121_v6, %v33_v4  ;;  %v189_v57 = vsub.f32 %v625_v23, %v181_v7  ;;  %v183_v23 = vmul.f32 %v466_v9, %v566_v45  ;;  %v176_v6 = vsub.f32 1.0, %v510_v25 }
  0x8b   :  { %304 = vrot.lane.b32.xlu0 %v286_v26, %s426_s0  ;;  %v248_v43 = vsub.f32 %v656_v13, %v240_v34  ;;  %v273_v26 = vpop.permute.xlu2 %272  ;;  %v139_v34 = vsel %vm138_vm7, %v136_v58, %v133_v33  ;;  %v175_v33 = vsub.f32 1.0, %v507_v24  ;;  %v186_v9 = vmul.f32 %v502_v22, %v572_v51 }
  0x8c   :  { %v249_v38 = vsub.f32 %v695_v19, %v241_v47  ;;  %v147_v52 = vadd.f32 %v139_v34, %v35_v21  ;;  %v197_v61 = vmul.f32 %v189_v57, %v173_v62  ;;  %v187_v25 = vmul.f32 %v518_v27, %v592_v29 }
  0x8d   :  { %v288_v59 = vmul.f32 %v269_v56, %v248_v43  ;;  %v177_v24 = vsub.f32 1.0, %v523_v28  ;;  %v194_v21 = vsub.f32 %v690_v16, %v186_v9  ;;  %v179_v22 = vsub.f32 1.0, %v535_v31 }
  0x8f   :  { %308 = vrot.lane.b32.xlu2 %v288_v59, %s426_s0  ;;  %v180_v59 = vmul.f32 %v451_v3, %v542_v32  ;;  %v182_v3 = vmul.f32 %v449_v2, %v553_v36  ;;  %v191_v2 = vsub.f32 %v669_v44, %v183_v23 }
  0x90   :  { %v225_v5 = vpop.permute.xlu1 %224  ;;  %v267_v50 = vpop.permute.xlu0 %266 }
  0x91   :  { %v242_v11 = vmul.f32 %v225_v5, %v572_v51  ;;  %v287_v12 = vmul.f32 %v267_v50, %v247_v0  ;;  %v188_v37 = vsub.f32 %v599_v46, %v180_v59  ;;  %v190_v8 = vsub.f32 %v639_v53, %v182_v3 }
  0x92   :  { %v184_v46 = vmul.f32 %v482_v15, %v560_v41  ;;  %v199_v53 = vmul.f32 %v191_v2, %v175_v33  ;;  %v185_v15 = vmul.f32 %v489_v17, %v577_v54  ;;  %v195_v51 = vsub.f32 %v147_v52, %v187_v25 }
  0x93   :  { %306 = vrot.lane.b32.xlu1 %v287_v12, %s426_s0  ;;  %v250_v20 = vsub.f32 %v690_v16, %v242_v11  ;;  %v196_v0 = vmul.f32 %v188_v37, %v172_v60  ;;  %v198_v50 = vmul.f32 %v190_v8, %v174_v14 }
  0x94   :  { %v192_v11 = vsub.f32 %v656_v13, %v184_v46  ;;  %v193_v47 = vsub.f32 %v695_v19, %v185_v15  ;;  %v203_v28 = vmul.f32 %v195_v51, %v179_v22 }
  0x95   :  { %v290_v40 = vmul.f32 %v273_v26, %v250_v20  ;;  %v178_v20 = vsub.f32 1.0, %v527_v30 }
  0x96   :  { %v200_v18 = vmul.f32 %v192_v11, %v176_v6 }
  0x97   :  { %v202_v34 = vmul.f32 %v194_v21, %v178_v20 }
  0x98   :  { %v271_v39 = vpop.permute.xlu1 %270  ;;  %v227_v1 = vpop.permute.xlu0 %226 }
  0x99   :  { %v289_v42 = vmul.f32 %v271_v39, %v249_v38  ;;  %v243_v49 = vmul.f32 %v227_v1, %v592_v29  ;;  %v201_v29 = vmul.f32 %v193_v47, %v177_v24 }
  0x9b   :  { %310 = vrot.lane.b32.xlu0 %v289_v42, %s426_s0  ;;  %312 = vrot.lane.b32.xlu1 %v290_v40, %s426_s0  ;;  %v251_v43 = vsub.f32 %v147_v52, %v243_v49 }
  0xa0   :  { %v275_v48 = vpop.permute.xlu0 %274 }
  0xa1   :  { %v291_v56 = vmul.f32 %v275_v48, %v251_v43 }
  0xa3   :  { %314 = vrot.lane.b32.xlu2 %v291_v56, %s426_s0 }
  0xe1   :  { %v303_v63 = vpop.permute.xlu2 %302 }
  0xe2   :  { %v325_v4 = vadd.f32 %v303_v63, %v197_v61 }
  0xe4   :  { %v334_v10 = vsel %vm332_vm8, %v325_v4, 0.0 }
  0xe9   :  { %v309_v58 = vpop.permute.xlu2 %308 }
  0xea   :  { %v328_v45 = vadd.f32 %v309_v58, %v200_v18 }
  0xec   :  { %v340_v27 = vsel %vm332_vm8, %v328_v45, 0.0 }
  0xf1   :  { %v301_v55 = vpop.permute.xlu1 %300 }
  0xf2   :  { %v324_v5 = vadd.f32 %v301_v55, %v196_v0 }
  0xf4   :  { %v333_v35 = vsel %vm332_vm8, %v324_v5, 0.0 }
  0xf5   :  { %v335_v32 = vadd.f32 %v334_v10, %v333_v35 }
  0xfd   :  { %v305_v12 = vpop.permute.xlu0 %304  ;;  %v315_v39 = vpop.permute.xlu2 %314 }
  0xfe   :  { %v326_v36 = vadd.f32 %v305_v12, %v198_v50  ;;  %v331_v42 = vadd.f32 %v315_v39, %v203_v28 }
 0x100   :  { %v336_v41 = vsel %vm332_vm8, %v326_v36, 0.0  ;;  %v346_v52 = vsel %vm332_vm8, %v331_v42, 0.0 }
 0x101   :  { %v337_v17 = vadd.f32 %v336_v41, %v335_v32 }
 0x105   :  { %v307_v13 = vpop.permute.xlu1 %306 }
 0x106   :  { %v327_v44 = vadd.f32 %v307_v13, %v199_v53 }
 0x108   :  { %v338_v54 = vsel %vm332_vm8, %v327_v44, 0.0 }
 0x109   :  { %v339_v26 = vadd.f32 %v338_v54, %v337_v17 }
 0x10b   :  { %v341_v38 = vadd.f32 %v340_v27, %v339_v26 }
 0x10d   :  { %v311_v1 = vpop.permute.xlu0 %310  ;;  %v313_v19 = vpop.permute.xlu1 %312 }
 0x10e   :  { %v329_v40 = vadd.f32 %v311_v1, %v201_v29  ;;  %v330_v30 = vadd.f32 %v313_v19, %v202_v34 }
 0x110   :  { %v342_v16 = vsel %vm332_vm8, %v329_v40, 0.0  ;;  %v344_v43 = vsel %vm332_vm8, %v330_v30, 0.0 }
 0x111   :  { %v343_v49 = vadd.f32 %v342_v16, %v341_v38 }
 0x113   :  { %v345_v31 = vadd.f32 %v344_v43, %v343_v49 }
 0x115   :  { %v347_v48 = vadd.f32 %v346_v52, %v345_v31 }
 0x117   :  { %348 = vadd.xlane.f32.xlu0 %v347_v48 }
 0x18a   :  { %v349_v56 = vpop.xlane.xlu0 %348 }
 0x18b   :  { %v350_v7 = vrot.slane %v349_v56, 4 }
 0x18d   :  { %v351_v57 = vadd.f32 %v350_v7, %v349_v56 }
 0x18f   :  { %v352_v59 = vrot.slane %v351_v57, 2 }
 0x191   :  { %v353_v62 = vadd.f32 %v352_v59, %v351_v57 }
 0x193   :  { %v354_v60 = vrot.slane %v353_v62, 1 }
 0x195   :  { %v355_v37 = vadd.f32 %v354_v60, %v353_v62 }
 0x197   :  { %374 = vpush %v355_v37 }
 0x1c8   :  { %s375_s16 = spop %374 }
 0x1c9   :  { %358 = sst [smem:[#allocation2]] %s375_s16 }
 0x1ca   :  { %367 = dma.smem_to_hbm %s427_s17, 16, %s365_s15, [#allocation3]  }
 0x1cb   :  { %423 = dma.done.wait [#allocation3], 16  }
 0x1cc   :  { %424 = vsyncadd [#allocation3], 4294967280 }
 0x1cd   :  { %372 = sfence }
 0x1ce   :  { %373 = vsyncpa [#allocation3], 1 }

</bundles_post_ra>
